<compile_context>
chip_gen: v5e
topology: v5e:2x2
jax: 0.10.0
libtpu: 0.0.40
codegen_flags: <defaults>
</compile_context>

<pallas_src>
import math

import jax
import jax.numpy as jnp
from jax.experimental import pallas as pl
from jax.experimental.pallas import tpu as pltpu


def make_pos_embedding(emb_size: int, maxlen: int = 5000) -> jnp.ndarray:
    """Deterministic sinusoidal table, identical to the PyTorch __init__."""
    den = jnp.exp(
        -jnp.arange(0, emb_size, 2, dtype=jnp.float32) * (math.log(10000.0) / emb_size)
    )
    pos = jnp.arange(0, maxlen, dtype=jnp.float32).reshape(maxlen, 1)
    pe = jnp.zeros((maxlen, emb_size), dtype=jnp.float32)
    pe = pe.at[:, 0::2].set(jnp.sin(pos * den))
    pe = pe.at[:, 1::2].set(jnp.cos(pos * den))
    return pe[:, None, :]  # (maxlen, 1, emb_size)


def _pick_block_s(S: int, B: int, E: int, itemsize: int, n_streams: int) -> int:
    """Largest sequence-block whose double-buffered tiles fit the VMEM budget,
    rounded so the flattened row-block (block_s * B) stays sublane(8)-aligned."""
    budget = 24 << 20                          # bytes for the big double-buffered streams
    tile_budget = budget // (2 * n_streams)    # per-tile bytes (2 buffers per stream)
    bytes_per_pos = B * E * itemsize           # one sequence position, flattened
    block_s = max(1, tile_budget // bytes_per_pos)
    if block_s >= S:
        return S                               # full extent: always a legal block
    block_s = max(8, (block_s // 8) * 8)       # keep block_s (and block_s*B) % 8 == 0
    return min(block_s, S)


def positional_encoding(
    x: jnp.ndarray,
    pos_embedding: jnp.ndarray,
    *,
    dropout_p: float = 0.0,
    training: bool = False,
    rng_key=None,
) -> jnp.ndarray:
    """Forward pass: dropout(x + pos_embedding[:S]) as a Pallas TPU kernel."""
    S, B, E = x.shape
    maxlen = pos_embedding.shape[0]
    assert S <= maxlen

    apply_dropout = bool(training) and dropout_p > 0.0

    # Free reshape (contiguous): rows become sublanes, E becomes lanes.
    x2 = x.reshape(S * B, E)
    # Tiny slice so the pos block can legally equal the full array extent.
    pos2 = pos_embedding[:S].reshape(S, E)

    n_streams = 3 if apply_dropout else 2      # x, out (+ dropout bits)
    block_s = _pick_block_s(S, B, E, x.dtype.itemsize, n_streams)
    grid = (pl.cdiv(S, block_s),)

    row_spec = pl.BlockSpec((block_s * B, E), lambda i: (i, 0))
    pos_spec = pl.BlockSpec((block_s, E), lambda i: (i, 0))

    compiler_params = pltpu.CompilerParams(
        dimension_semantics=("parallel",),     # independent blocks -> megacore on v7x
        vmem_limit_bytes=48 * 1024 * 1024,     # raise scoped VMEM, safe on v5e/v6e/v7x
    )

    def _add_pos(x_tile, pos_tile):
        # Broadcast pos rows over the batch: flattened row r = s*B + b gets pos[s].
        bs, e = pos_tile.shape
        bb = x_tile.shape[0] // bs
        pos_b = jnp.broadcast_to(pos_tile[:, None, :], (bs, bb, e)).reshape(bs * bb, e)
        return x_tile + pos_b

    if not apply_dropout:
        def kernel(x_ref, pos_ref, o_ref):
            o_ref[...] = _add_pos(x_ref[...], pos_ref[...]).astype(o_ref.dtype)

        out2 = pl.pallas_call(
            kernel,
            out_shape=jax.ShapeDtypeStruct((S * B, E), x.dtype),
            grid=grid,
            in_specs=[row_spec, pos_spec],
            out_specs=row_spec,
            compiler_params=compiler_params,
        )(x2, pos2)
    else:
        if rng_key is None:
            rng_key = jax.random.PRNGKey(0)
        keep_scale = 1.0 / (1.0 - dropout_p)
        # Integer-domain keep test: drop iff bits < round(p * 2^32).
        drop_threshold = min(int(round(dropout_p * (2 ** 32))), 2 ** 32 - 1)
        bits = jax.random.bits(rng_key, (S * B, E), dtype=jnp.uint32)

        def kernel(x_ref, pos_ref, bits_ref, o_ref):
            y = _add_pos(x_ref[...], pos_ref[...])
            keep = bits_ref[...] >= jnp.uint32(drop_threshold)
            y = jnp.where(keep, y * keep_scale, jnp.zeros_like(y))
            o_ref[...] = y.astype(o_ref.dtype)

        out2 = pl.pallas_call(
            kernel,
            out_shape=jax.ShapeDtypeStruct((S * B, E), x.dtype),
            grid=grid,
            in_specs=[row_spec, pos_spec, row_spec],
            out_specs=row_spec,
            compiler_params=compiler_params,
        )(x2, pos2, bits)

    return out2.reshape(S, B, E)


if __name__ == "__main__":
    # Small shapes consistent with the module: seq=8, batch=2, emb=32.
    SEQ, BATCH, EMB = 8, 2, 32
    DROPOUT = 0.1
    MAXLEN = 64  # small maxlen for the demo table (>= SEQ)

    key = jax.random.PRNGKey(0)
    x = jax.random.normal(key, (SEQ, BATCH, EMB), dtype=jnp.float32)
    pos_emb = make_pos_embedding(EMB, maxlen=MAXLEN)

    # Eval-mode forward (dropout is identity): deterministic check vs pure JAX.
    out = jax.block_until_ready(
        positional_encoding(x, pos_emb, dropout_p=DROPOUT, training=False)
    )
    ref = x + pos_emb[:SEQ, :]
    assert out.shape == x.shape and out.dtype == x.dtype
    assert jnp.allclose(out, ref, atol=1e-6, rtol=1e-6), "mismatch vs reference"

    # Training-mode forward: surviving elements equal ref / (1 - p).
    out_train = jax.block_until_ready(
        positional_encoding(
            x, pos_emb, dropout_p=DROPOUT, training=True, rng_key=jax.random.PRNGKey(123)
        )
    )
    mask = out_train != 0
    assert jnp.allclose(
        jnp.where(mask, out_train, 0.0),
        jnp.where(mask, ref / (1.0 - DROPOUT), 0.0),
        atol=1e-5,
        rtol=1e-5,
    )

    print("KERNEL_OK")
</pallas_src>

<mosaic_0001>
module attributes {stable_mosaic.version = 11 : i64} {
  func.func @kernel(%arg0: i32, %arg1: memref<16x32xf32, #tpu.memory_space<vmem>>, %arg2: memref<8x32xf32, #tpu.memory_space<vmem>>, %arg3: memref<16x32xf32, #tpu.memory_space<vmem>>) attributes {dimension_semantics = [#tpu.dimension_semantics<parallel>], iteration_bounds = array<i64: 1>, scalar_prefetch = 0 : i64, scratch_operands = 0 : i64, tpu.core_type = #tpu.core_type<tc>, window_params = [{transform_indices = @transform_0, window_bounds = array<i64: 16, 32>}, {transform_indices = @transform_1, window_bounds = array<i64: 8, 32>}, {transform_indices = @transform_2, window_bounds = array<i64: 16, 32>}]} {
    %c0 = arith.constant 0 : index
    %c0_0 = arith.constant 0 : index
    %0 = vector.load %arg1[%c0, %c0_0] : memref<16x32xf32, #tpu.memory_space<vmem>>, vector<16x32xf32>
    %c0_1 = arith.constant 0 : index
    %c0_2 = arith.constant 0 : index
    %1 = vector.load %arg2[%c0_1, %c0_2] : memref<8x32xf32, #tpu.memory_space<vmem>>, vector<8x32xf32>
    %2 = vector.shape_cast %1 : vector<8x32xf32> to vector<8x1x32xf32>
    %3 = vector.shape_cast %2 : vector<8x1x32xf32> to vector<8x1x32xf32>
    %4 = vector.broadcast %3 : vector<8x1x32xf32> to vector<8x2x32xf32>
    %5 = vector.shape_cast %4 : vector<8x2x32xf32> to vector<16x32xf32>
    %6 = arith.addf %0, %5 : vector<16x32xf32>
    %c0_3 = arith.constant 0 : index
    %c0_4 = arith.constant 0 : index
    %7 = vector.load %arg3[%c0_3, %c0_4] : memref<16x32xf32, #tpu.memory_space<vmem>>, vector<16x32xf32>
    tpu.vector_store %arg3[%c0_3, %c0_4], %6 {strides = array<i32>} : memref<16x32xf32, #tpu.memory_space<vmem>>, vector<16x32xf32>,
    return
  }
  func.func @transform_0(%arg0: i32) -> (i32, i32) {
    %c0_i32 = arith.constant 0 : i32
    %c0_i32_0 = arith.constant 0 : i32
    return %arg0, %c0_i32 : i32, i32
  }
  func.func @transform_1(%arg0: i32) -> (i32, i32) {
    %c0_i32 = arith.constant 0 : i32
    %c0_i32_0 = arith.constant 0 : i32
    return %arg0, %c0_i32 : i32, i32
  }
  func.func @transform_2(%arg0: i32) -> (i32, i32) {
    %c0_i32 = arith.constant 0 : i32
    %c0_i32_0 = arith.constant 0 : i32
    return %arg0, %c0_i32 : i32, i32
  }
}

</mosaic_0001>

<bundles_post_ra>
// kernel: tpu_custom_call.1
= control target key start
LH: loop header
LB: loop body
LE: loop exit
PB: predicated region body
PF: predicated region fallthrough
CT: control target
= control target key end

     0   :  { %7 = vsyncpa [#allocation3], 0  ;;  %s223_s0 = inlined_call_operand.hbm [shape: f32[16,32], index: 0, kind: input, shape index: {}]   ;;  %s224_s1 = inlined_call_operand.hbm [shape: f32[8,32], index: 1, kind: input, shape index: {}]   ;;  %s225_s2 = inlined_call_operand.hbm [shape: f32[16,32], index: 2, kind: output, shape index: {}]  }
   0x1   :  { %8 = vsyncpa [#allocation6], 0 }
   0x2   :  { %9 = vsyncpa [#allocation4], 0  ;;  %s14_s11 = sshll.u32 %s223_s0, 4  ;;  %s188_s12 = smov [#allocation2]   ;;  %s15_s11 = int_to_ptr.hbm [resolvable:$true] %s14_s11 }
   0x3   :  { %s16_s13 = sshll.u32 %s188_s12, 4  ;;  %s28_s16 = sshll.u32 %s224_s1, 4  ;;  %s17_s13 = int_to_ptr.vmem [resolvable:$true] %s16_s13  ;;  %s29_s16 = int_to_ptr.hbm [resolvable:$true] %s28_s16 }
   0x4   :  { %s189_s17 = smov 128   ;;  %s190_s18 = smov 8  }
   0x5   :  { %22 = dma.hbm_to_vmem [thread:$0]  %s15_s11, 256, %s17_s13, [#allocation3], %s189_s17, %s189_s17, %s190_s18  }
   0x6   :  { %s191_s19 = smov [#allocation5]  }
   0x7   :  { %s30_s20 = sshll.u32 %s191_s19, 4  ;;  %s31_s20 = int_to_ptr.vmem [resolvable:$true] %s30_s20 }
   0x8   :  { %33 = dma.hbm_to_vmem [thread:$0]  %s29_s16, 128, %s31_s20, [#allocation6]  }
   0x9   :  { %182 = dma.done.wait [#allocation3], 256  }
   0xa   :  { %183 = vsyncadd [#allocation3], 4294967040 }
   0xb   :  { %184 = dma.done.wait [#allocation6], 128  }
   0xc   :  { %185 = vsyncadd [#allocation6], 4294967168  ;;  %v44_v0 = vld [vmem:[#allocation5] sm:$0xff]  ;;  %v42_v16 = vld [vmem:[#allocation2] sm:$0xff]  ;;  %vm82_vm0 = vcmask 261120   ;;  %s192_s0 = smov [#allocation7]  }
   0xd   :  { %v53_v1 = vperm.slane %v44_v0, 0  ;;  %v46_v2 = vrot.slane %v44_v0, 1  ;;  %v47_v3 = vrot.slane %v44_v0, 2  ;;  %v48_v4 = vrot.slane %v44_v0, 3  ;;  %v43_v19 = vld [vmem:[#allocation2 + $0x8] sm:$0xff]  ;;  %s89_s1 = sshll.u32 %s192_s0, 4  ;;  %s90_s1 = int_to_ptr.vmem [resolvable:$true] %s89_s1 }
   0xe   :  { %v49_v5 = vrot.slane %v44_v0, 4  ;;  %v50_v6 = vrot.slane %v44_v0, 5  ;;  %v51_v7 = vrot.slane %v44_v0, 6  ;;  %v52_v11 = vrot.slane %v44_v0, 7  ;;  %s91_s23 = sshll.u32 %s225_s2, 4  ;;  %s92_s23 = int_to_ptr.hbm [resolvable:$true] %s91_s23 }
   0xf   :  { %61 = vst [vmem:[#allocation1] ss:$4 sm:$0xff] %v53_v1  ;;  %v54_v8 = vperm.slane %v46_v2, 0  ;;  %v55_v9 = vperm.slane %v47_v3, 0  ;;  %v56_v10 = vperm.slane %v48_v4, 0 }
  0x10   :  { %v57_v12 = vperm.slane %v49_v5, 0  ;;  %v58_v13 = vperm.slane %v50_v6, 0  ;;  %v59_v14 = vperm.slane %v51_v7, 0  ;;  %v60_v15 = vperm.slane %v52_v11, 0 }
  0x11   :  { %63 = vst [vmem:[#allocation1 + $0x1] ss:$4 sm:$0xff] %v54_v8 }
  0x12   :  { %65 = vst [vmem:[#allocation1 + $0x2] ss:$4 sm:$0xff] %v55_v9 }
  0x13   :  { %67 = vst [vmem:[#allocation1 + $0x3] ss:$4 sm:$0xff] %v56_v10 }
  0x14   :  { %69 = vst [vmem:[#allocation1 + $0x20] ss:$4 sm:$0xff] %v57_v12 }
  0x15   :  { %71 = vst [vmem:[#allocation1 + $0x21] ss:$4 sm:$0xff] %v58_v13 }
  0x16   :  { %73 = vst [vmem:[#allocation1 + $0x22] ss:$4 sm:$0xff] %v59_v14 }
  0x17   :  { %75 = vst [vmem:[#allocation1 + $0x23] ss:$4 sm:$0xff] %v60_v15 }
  0x1a   :  { %v76_v17 = vld.sshfl [vmem:[#allocation1] sm:$0xff pattern:$0x73625140] }
  0x1b   :  { %v80_v18 = vadd.f32 %v76_v17, %v42_v16 }
  0x1d   :  { %83 = vst.msk [vmem:[#allocation7] sm:$0xff] %vm82_vm0, %v80_v18 }
  0x1e   :  { %v77_v20 = vld.sshfl [vmem:[#allocation1 + $0x20] sm:$0xff pattern:$0x73625140] }
  0x1f   :  { %v81_v21 = vadd.f32 %v77_v20, %v43_v19 }
  0x21   :  { %84 = vst.msk [vmem:[#allocation7 + $0x8] sm:$0xff] %vm82_vm0, %v81_v21 }
  0x22   :  { %97 = dma.vmem_to_hbm [thread:$0]  %s90_s1, 256, %s92_s23, [#allocation4], %s189_s17, %s189_s17, %s190_s18  }
  0x23   :  { %186 = dma.done.wait [#allocation4], 256  }
  0x24   :  { %187 = vsyncadd [#allocation4], 4294967040 }
  0x25   :  { %102 = vsyncpa [#allocation3], 1 }
  0x26   :  { %103 = vsyncpa [#allocation6], 1 }
  0x27   :  { %104 = vsyncpa [#allocation4], 1 }

</bundles_post_ra>
